<compile_context>
chip_gen: v7x
topology: tpu7x:2x2x1
jax: 0.10.0
libtpu: 0.0.40
codegen_flags: <defaults>
</compile_context>

<pallas_src>
import jax
import jax.numpy as jnp
from jax.experimental import pallas as pl
from jax.experimental.pallas import tpu as pltpu

_LANE = 128
_MAX_TILE_ROWS = 4096      # 4096*128*4B = 2 MiB/input block; x2 inputs x2 bufs = 8 MiB
_NCORES = 2                # leading "parallel" grid axis (sharded across TCs on v7x)

_SMOOTH = 1.0
_ALPHA = 0.7
_GAMMA = 0.75


def _make_kernel(*, full_rows, tile_rows, acc_rows, steps_per_core, total_blocks):
    """Builds the kernel body; every tiling parameter is static (trace-time)."""
    lanes = _LANE
    n_grp = tile_rows // acc_rows
    num_full_blocks = full_rows // tile_rows          # blocks with no invalid rows
    emit_masked = total_blocks > num_full_blocks      # static: is a masked path needed?

    def kernel(x_ref, t_ref, tp_ref, st_ref, sp_ref):
        j = pl.program_id(1)
        blk = pl.program_id(0) * steps_per_core + j   # logical row-block index

        @pl.when(j == 0)
        def _init():
            tp_ref[...] = jnp.zeros_like(tp_ref)
            st_ref[...] = jnp.zeros_like(st_ref)
            sp_ref[...] = jnp.zeros_like(sp_ref)

        def accumulate(mask_rows):
            x = x_ref[...].astype(jnp.float32)
            t = t_ref[...].astype(jnp.float32)
            # sigmoid(x) = 0.5*tanh(0.5*x) + 0.5  (1 EUP op + 2 VPU ops)
            p = 0.5 * jnp.tanh(0.5 * x) + 0.5
            if mask_rows:
                # Row-level masking only (lane tail handled in the wrapper).
                # rem may be <= 0 for phantom blocks -> everything masked.
                rem = full_rows - blk * tile_rows
                row = jax.lax.broadcasted_iota(jnp.int32, (tile_rows, lanes), 0)
                keep = row < rem
                p = jnp.where(keep, p, 0.0)
                t = jnp.where(keep, t, 0.0)
            # Sublane-grouped partial sums: the reshape keeps the (8,128)
            # tiling (layout no-op) and sum(axis=0) is pure VPU adds spread
            # over (acc_rows/8)*3 independent vreg chains.
            tp_ref[0] += (t * p).reshape(n_grp, acc_rows, lanes).sum(axis=0)
            st_ref[0] += t.reshape(n_grp, acc_rows, lanes).sum(axis=0)
            sp_ref[0] += p.reshape(n_grp, acc_rows, lanes).sum(axis=0)

        if emit_masked:
            @pl.when(blk < num_full_blocks)
            def _full_block():
                accumulate(mask_rows=False)

            @pl.when(blk >= num_full_blocks)
            def _ragged_block():
                accumulate(mask_rows=True)
        else:
            accumulate(mask_rows=False)

    return kernel


def _finalize(tp, st, sp):
    fn = st - tp                               # sum(t * (1 - p))
    fp = sp - tp                               # sum((1 - t) * p)
    tversky = (tp + _SMOOTH) / (tp + _ALPHA * fn + (1.0 - _ALPHA) * fp + _SMOOTH)
    return jnp.power(1.0 - tversky, _GAMMA)


def focal_tversky_loss(inputs, targets, *, max_tile_rows=_MAX_TILE_ROWS):
    """Pallas implementation of FocalTverskyLoss.forward(inputs, targets)."""
    x_flat = inputs.reshape(-1)
    t_flat = targets.reshape(-1)
    n = x_flat.shape[0]

    full_rows = n // _LANE
    tail_len = n - full_rows * _LANE

    # <128-element ragged tail: reduced in plain JAX (no full-array pad copy).
    if tail_len:
        xt = x_flat[full_rows * _LANE:].astype(jnp.float32)
        tt = t_flat[full_rows * _LANE:].astype(jnp.float32)
        pt = 0.5 * jnp.tanh(0.5 * xt) + 0.5
        tail_tp, tail_st, tail_sp = jnp.sum(tt * pt), jnp.sum(tt), jnp.sum(pt)
    else:
        tail_tp = tail_st = tail_sp = jnp.float32(0.0)

    if full_rows == 0:                         # tiny input: nothing for the kernel
        return _finalize(tail_tp, tail_st, tail_sp)

    if tail_len:
        # Only taken when n % 128 != 0 (rare for segmentation shapes); XLA may
        # materialize this prefix slice.
        x_main = x_flat[: full_rows * _LANE]
        t_main = t_flat[: full_rows * _LANE]
    else:
        x_main = x_flat                        # reshape below is a free bitcast
        t_main = t_flat
    x2 = x_main.reshape(full_rows, _LANE)
    t2 = t_main.reshape(full_rows, _LANE)

    # ---- row tiling (all static) ----
    tile_rows = min(max_tile_rows, full_rows)
    if tile_rows % 8:
        # Tiny input whose row count is not a sublane multiple: pad a few rows
        # (< 8 rows, < 4 KiB); padded rows are masked out in-kernel.
        padded = ((full_rows + 7) // 8) * 8
        x2 = jnp.pad(x2, ((0, padded - full_rows), (0, 0)))
        t2 = jnp.pad(t2, ((0, padded - full_rows), (0, 0)))
        tile_rows = padded
    rows_in_slab = x2.shape[0]

    if tile_rows % 32 == 0:
        acc_rows = 32                          # 4 vregs/accumulator -> 12 add chains
    elif tile_rows % 16 == 0:
        acc_rows = 16
    else:
        acc_rows = 8

    n_blocks = pl.cdiv(rows_in_slab, tile_rows)
    ncores = _NCORES if n_blocks >= _NCORES else 1
    steps_per_core = pl.cdiv(n_blocks, ncores)
    total_blocks = ncores * steps_per_core
    last_block = n_blocks - 1

    def row_block(c, j):
        # Phantom blocks (total_blocks > n_blocks) are clamped onto the last
        # real block; their contribution is masked to zero in the kernel.
        return (jnp.minimum(c * steps_per_core + j, last_block), 0)

    kernel = _make_kernel(full_rows=full_rows, tile_rows=tile_rows,
                          acc_rows=acc_rows, steps_per_core=steps_per_core,
                          total_blocks=total_blocks)

    part = jax.ShapeDtypeStruct((ncores, acc_rows, _LANE), jnp.float32)
    part_spec = pl.BlockSpec((1, acc_rows, _LANE), lambda c, j: (c, 0, 0))

    tp_p, st_p, sp_p = pl.pallas_call(
        kernel,
        out_shape=(part, part, part),
        grid_spec=pltpu.PrefetchScalarGridSpec(
            num_scalar_prefetch=0,
            grid=(ncores, steps_per_core),
            in_specs=[
                pl.BlockSpec((tile_rows, _LANE), row_block),
                pl.BlockSpec((tile_rows, _LANE), row_block),
            ],
            out_specs=(part_spec, part_spec, part_spec),
        ),
        compiler_params=pltpu.CompilerParams(
            dimension_semantics=("parallel", "arbitrary"),
            vmem_limit_bytes=32 * 1024 * 1024,
        ),
    )(x2, t2)

    tp = jnp.sum(tp_p) + tail_tp               # sum(t * p)
    st = jnp.sum(st_p) + tail_st               # sum(t)
    sp = jnp.sum(sp_p) + tail_sp                # sum(p)
    return _finalize(tp, st, sp)


def _reference_loss(inputs, targets):
    """Pure-JAX reference mirroring the PyTorch module exactly."""
    p = jax.nn.sigmoid(inputs.astype(jnp.float32)).reshape(-1)
    t = targets.astype(jnp.float32).reshape(-1)
    tp = jnp.sum(t * p)
    fn = jnp.sum(t * (1.0 - p))
    fp = jnp.sum((1.0 - t) * p)
    tversky = (tp + _SMOOTH) / (tp + _ALPHA * fn + (1.0 - _ALPHA) * fp + _SMOOTH)
    return jnp.power(1.0 - tversky, _GAMMA)


if __name__ == "__main__":
    loss_fn = jax.jit(focal_tversky_loss, static_argnames=("max_tile_rows",))
    key = jax.random.PRNGKey(0)

    # Small deterministic cases exercising every code path:
    #  1) typical (N, C, H, W) logits, lane-exact, single block
    #  2) multi-block grid (both axes, pure unmasked fast path)
    #  3) partial row-block + phantom block + <128-element ragged tail
    cases = [
        ((2, 4, 16, 16), {}),
        ((2, 4, 32, 16), {"max_tile_rows": 8}),
        ((2, 3, 25, 16), {"max_tile_rows": 8}),
    ]
    for shape, kw in cases:
        key, k_in, k_tg = jax.random.split(key, 3)
        inputs = jax.random.normal(k_in, shape, dtype=jnp.float32)
        targets = jax.random.bernoulli(k_tg, 0.5, shape).astype(jnp.float32)

        loss = jax.block_until_ready(loss_fn(inputs, targets, **kw))
        ref = _reference_loss(inputs, targets)
        assert jnp.allclose(loss, ref, rtol=5e-5, atol=1e-6), (shape, loss, ref)

    print("KERNEL_OK")
</pallas_src>

<mosaic_0001>
module attributes {stable_mosaic.version = 11 : i64} {
  func.func @kernel(%arg0: i32, %arg1: i32, %arg2: memref<16x128xf32, #tpu.memory_space<vmem>>, %arg3: memref<16x128xf32, #tpu.memory_space<vmem>>, %arg4: memref<1x16x128xf32, #tpu.memory_space<vmem>>, %arg5: memref<1x16x128xf32, #tpu.memory_space<vmem>>, %arg6: memref<1x16x128xf32, #tpu.memory_space<vmem>>) attributes {dimension_semantics = [#tpu.dimension_semantics<parallel>, #tpu.dimension_semantics<arbitrary>], iteration_bounds = array<i64: 1, 1>, scalar_prefetch = 0 : i64, scratch_operands = 0 : i64, tpu.core_type = #tpu.core_type<tc>, window_params = [{transform_indices = @transform_0, window_bounds = array<i64: 16, 128>}, {transform_indices = @transform_1, window_bounds = array<i64: 16, 128>}, {transform_indices = @transform_2, window_bounds = array<i64: 1, 16, 128>}, {transform_indices = @transform_3, window_bounds = array<i64: 1, 16, 128>}, {transform_indices = @transform_4, window_bounds = array<i64: 1, 16, 128>}]} {
    %c0_i32 = arith.constant 0 : i32
    %0 = arith.cmpi eq, %arg1, %c0_i32 : i32
    %1 = arith.extui %0 : i1 to i32
    %c0_i32_0 = arith.constant 0 : i32
    %2 = arith.cmpi ne, %1, %c0_i32_0 : i32
    scf.if %2 {
      %cst_27 = arith.constant 0.000000e+00 : f32
      %37 = vector.broadcast %cst_27 : f32 to vector<1x16x128xf32>
      %c0_28 = arith.constant 0 : index
      %c0_29 = arith.constant 0 : index
      %c0_30 = arith.constant 0 : index
      %38 = vector.load %arg4[%c0_28, %c0_29, %c0_30] : memref<1x16x128xf32, #tpu.memory_space<vmem>>, vector<1x16x128xf32>
      tpu.vector_store %arg4[%c0_28, %c0_29, %c0_30], %37 {strides = array<i32>} : memref<1x16x128xf32, #tpu.memory_space<vmem>>, vector<1x16x128xf32>,
      %cst_31 = arith.constant 0.000000e+00 : f32
      %39 = vector.broadcast %cst_31 : f32 to vector<1x16x128xf32>
      %c0_32 = arith.constant 0 : index
      %c0_33 = arith.constant 0 : index
      %c0_34 = arith.constant 0 : index
      %40 = vector.load %arg5[%c0_32, %c0_33, %c0_34] : memref<1x16x128xf32, #tpu.memory_space<vmem>>, vector<1x16x128xf32>
      tpu.vector_store %arg5[%c0_32, %c0_33, %c0_34], %39 {strides = array<i32>} : memref<1x16x128xf32, #tpu.memory_space<vmem>>, vector<1x16x128xf32>,
      %cst_35 = arith.constant 0.000000e+00 : f32
      %41 = vector.broadcast %cst_35 : f32 to vector<1x16x128xf32>
      %c0_36 = arith.constant 0 : index
      %c0_37 = arith.constant 0 : index
      %c0_38 = arith.constant 0 : index
      %42 = vector.load %arg6[%c0_36, %c0_37, %c0_38] : memref<1x16x128xf32, #tpu.memory_space<vmem>>, vector<1x16x128xf32>
      tpu.vector_store %arg6[%c0_36, %c0_37, %c0_38], %41 {strides = array<i32>} : memref<1x16x128xf32, #tpu.memory_space<vmem>>, vector<1x16x128xf32>,
    } else {
    }
    %c0 = arith.constant 0 : index
    %c0_1 = arith.constant 0 : index
    %3 = vector.load %arg2[%c0, %c0_1] : memref<16x128xf32, #tpu.memory_space<vmem>>, vector<16x128xf32>
    %c0_2 = arith.constant 0 : index
    %c0_3 = arith.constant 0 : index
    %4 = vector.load %arg3[%c0_2, %c0_3] : memref<16x128xf32, #tpu.memory_space<vmem>>, vector<16x128xf32>
    %cst = arith.constant 5.000000e-01 : f32
    %5 = vector.broadcast %cst : f32 to vector<16x128xf32>
    %6 = arith.mulf %5, %3 : vector<16x128xf32>
    %7 = math.tanh %6 : vector<16x128xf32>
    %cst_4 = arith.constant 5.000000e-01 : f32
    %8 = vector.broadcast %cst_4 : f32 to vector<16x128xf32>
    %9 = arith.mulf %8, %7 : vector<16x128xf32>
    %cst_5 = arith.constant 5.000000e-01 : f32
    %10 = vector.broadcast %cst_5 : f32 to vector<16x128xf32>
    %11 = arith.addf %9, %10 : vector<16x128xf32>
    %c0_6 = arith.constant 0 : index
    %c0_7 = arith.constant 0 : index
    %c0_8 = arith.constant 0 : index
    %12 = vector.load %arg4[%c0_6, %c0_7, %c0_8] : memref<1x16x128xf32, #tpu.memory_space<vmem>>, vector<1x16x128xf32>
    %13 = vector.shape_cast %12 : vector<1x16x128xf32> to vector<16x128xf32>
    %14 = arith.mulf %4, %11 : vector<16x128xf32>
    %15 = vector.shape_cast %14 : vector<16x128xf32> to vector<1x16x128xf32>
    %cst_9 = arith.constant dense<0.000000e+00> : vector<16x128xf32>
    %16 = vector.multi_reduction <add>, %15, %cst_9 [0] : vector<1x16x128xf32> to vector<16x128xf32>
    %17 = arith.addf %13, %16 : vector<16x128xf32>
    %c0_10 = arith.constant 0 : index
    %c0_11 = arith.constant 0 : index
    %c0_12 = arith.constant 0 : index
    %18 = vector.load %arg4[%c0_10, %c0_11, %c0_12] : memref<1x16x128xf32, #tpu.memory_space<vmem>>, vector<1x16x128xf32>
    %19 = vector.shape_cast %18 : vector<1x16x128xf32> to vector<16x128xf32>
    %20 = vector.shape_cast %17 : vector<16x128xf32> to vector<1x16x128xf32>
    tpu.vector_store %arg4[%c0_10, %c0_11, %c0_12], %20 {strides = array<i32>} : memref<1x16x128xf32, #tpu.memory_space<vmem>>, vector<1x16x128xf32>,
    %c0_13 = arith.constant 0 : index
    %c0_14 = arith.constant 0 : index
    %c0_15 = arith.constant 0 : index
    %21 = vector.load %arg5[%c0_13, %c0_14, %c0_15] : memref<1x16x128xf32, #tpu.memory_space<vmem>>, vector<1x16x128xf32>
    %22 = vector.shape_cast %21 : vector<1x16x128xf32> to vector<16x128xf32>
    %23 = vector.shape_cast %4 : vector<16x128xf32> to vector<1x16x128xf32>
    %cst_16 = arith.constant dense<0.000000e+00> : vector<16x128xf32>
    %24 = vector.multi_reduction <add>, %23, %cst_16 [0] : vector<1x16x128xf32> to vector<16x128xf32>
    %25 = arith.addf %22, %24 : vector<16x128xf32>
    %c0_17 = arith.constant 0 : index
    %c0_18 = arith.constant 0 : index
    %c0_19 = arith.constant 0 : index
    %26 = vector.load %arg5[%c0_17, %c0_18, %c0_19] : memref<1x16x128xf32, #tpu.memory_space<vmem>>, vector<1x16x128xf32>
    %27 = vector.shape_cast %26 : vector<1x16x128xf32> to vector<16x128xf32>
    %28 = vector.shape_cast %25 : vector<16x128xf32> to vector<1x16x128xf32>
    tpu.vector_store %arg5[%c0_17, %c0_18, %c0_19], %28 {strides = array<i32>} : memref<1x16x128xf32, #tpu.memory_space<vmem>>, vector<1x16x128xf32>,
    %c0_20 = arith.constant 0 : index
    %c0_21 = arith.constant 0 : index
    %c0_22 = arith.constant 0 : index
    %29 = vector.load %arg6[%c0_20, %c0_21, %c0_22] : memref<1x16x128xf32, #tpu.memory_space<vmem>>, vector<1x16x128xf32>
    %30 = vector.shape_cast %29 : vector<1x16x128xf32> to vector<16x128xf32>
    %31 = vector.shape_cast %11 : vector<16x128xf32> to vector<1x16x128xf32>
    %cst_23 = arith.constant dense<0.000000e+00> : vector<16x128xf32>
    %32 = vector.multi_reduction <add>, %31, %cst_23 [0] : vector<1x16x128xf32> to vector<16x128xf32>
    %33 = arith.addf %30, %32 : vector<16x128xf32>
    %c0_24 = arith.constant 0 : index
    %c0_25 = arith.constant 0 : index
    %c0_26 = arith.constant 0 : index
    %34 = vector.load %arg6[%c0_24, %c0_25, %c0_26] : memref<1x16x128xf32, #tpu.memory_space<vmem>>, vector<1x16x128xf32>
    %35 = vector.shape_cast %34 : vector<1x16x128xf32> to vector<16x128xf32>
    %36 = vector.shape_cast %33 : vector<16x128xf32> to vector<1x16x128xf32>
    tpu.vector_store %arg6[%c0_24, %c0_25, %c0_26], %36 {strides = array<i32>} : memref<1x16x128xf32, #tpu.memory_space<vmem>>, vector<1x16x128xf32>,
    return
  }
  func.func @transform_0(%arg0: i32, %arg1: i32) -> (i32, i32) {
    %c1_i32 = arith.constant 1 : i32
    %0 = arith.muli %arg0, %c1_i32 : i32
    %1 = arith.addi %0, %arg1 : i32
    %c0_i32 = arith.constant 0 : i32
    %2 = arith.minsi %1, %c0_i32 : i32
    %c0_i32_0 = arith.constant 0 : i32
    %c0_i32_1 = arith.constant 0 : i32
    return %2, %c0_i32_0 : i32, i32
  }
  func.func @transform_1(%arg0: i32, %arg1: i32) -> (i32, i32) {
    %c1_i32 = arith.constant 1 : i32
    %0 = arith.muli %arg0, %c1_i32 : i32
    %1 = arith.addi %0, %arg1 : i32
    %c0_i32 = arith.constant 0 : i32
    %2 = arith.minsi %1, %c0_i32 : i32
    %c0_i32_0 = arith.constant 0 : i32
    %c0_i32_1 = arith.constant 0 : i32
    return %2, %c0_i32_0 : i32, i32
  }
  func.func @transform_2(%arg0: i32, %arg1: i32) -> (i32, i32, i32) {
    %c0_i32 = arith.constant 0 : i32
    %c0_i32_0 = arith.constant 0 : i32
    %c0_i32_1 = arith.constant 0 : i32
    return %arg0, %c0_i32, %c0_i32_0 : i32, i32, i32
  }
  func.func @transform_3(%arg0: i32, %arg1: i32) -> (i32, i32, i32) {
    %c0_i32 = arith.constant 0 : i32
    %c0_i32_0 = arith.constant 0 : i32
    %c0_i32_1 = arith.constant 0 : i32
    return %arg0, %c0_i32, %c0_i32_0 : i32, i32, i32
  }
  func.func @transform_4(%arg0: i32, %arg1: i32) -> (i32, i32, i32) {
    %c0_i32 = arith.constant 0 : i32
    %c0_i32_0 = arith.constant 0 : i32
    %c0_i32_1 = arith.constant 0 : i32
    return %arg0, %c0_i32, %c0_i32_0 : i32, i32, i32
  }
}

</mosaic_0001>

<bundles_post_ra>
// kernel: focal_tversky_loss.1
= control target key start
LH: loop header
LB: loop body
LE: loop exit
PB: predicated region body
PF: predicated region fallthrough
CT: control target
= control target key end

     0   :  { %s210_s0 = inlined_call_operand.vmem [shape: f32[16,128], index: 0, kind: input, shape index: {}]   ;;  %s211_s1 = inlined_call_operand.vmem [shape: f32[16,128], index: 1, kind: input, shape index: {}]   ;;  %s212_s3 = inlined_call_operand.vmem [shape: f32[1,16,128], index: 3, kind: output, shape index: {1}]   ;;  %s213_s4 = inlined_call_operand.vmem [shape: f32[1,16,128], index: 4, kind: output, shape index: {2}]   ;;  %s214_s2 = inlined_call_operand.vmem [shape: f32[1,16,128], index: 2, kind: output, shape index: {0}]  }
   0x1   :  { %v88_v0 = vld [vmem:[%s210_s0] sm:$0xff]  ;;  %v89_v2 = vld [vmem:[%s210_s0 + $0x8] sm:$0xff] }
   0x2   :  { %v90_v1 = vld [vmem:[%s211_s1] sm:$0xff]  ;;  %v92_v3 = vmul.f32 0.5, %v88_v0  ;;  %v91_v4 = vld [vmem:[%s211_s1 + $0x8] sm:$0xff]  ;;  %v93_v5 = vmul.f32 0.5, %v89_v2 }
   0x3   :  { %116 = vst [vmem:[%s212_s3] sm:$0xff] %v90_v1  ;;  %117 = vst [vmem:[%s212_s3 + $0x8] sm:$0xff] %v91_v4 }
   0x4   :  { %151 = vtanh.f32 %v92_v3 }
   0x5   :  { %153 = vtanh.f32 %v93_v5 }
   0xe   :  { %v152_v6 = vpop.eup %151 }
   0xf   :  { %v154_v7 = vpop.eup %153  ;;  %v96_v8 = vmul.f32 0.5, %v152_v6 }
  0x10   :  { %v97_v9 = vmul.f32 0.5, %v154_v7 }
  0x11   :  { %v98_v10 = vadd.f32 0.5, %v96_v8 }
  0x12   :  { %v99_v11 = vadd.f32 0.5, %v97_v9 }
  0x13   :  { %v102_v12 = vmul.f32 %v98_v10, %v90_v1  ;;  %124 = vst [vmem:[%s213_s4] sm:$0xff] %v98_v10 }
  0x14   :  { %v103_v13 = vmul.f32 %v99_v11, %v91_v4  ;;  %125 = vst [vmem:[%s213_s4 + $0x8] sm:$0xff] %v99_v11 }
  0x15   :  { %108 = vst [vmem:[%s214_s2] sm:$0xff] %v102_v12 }
  0x16   :  { %109 = vst [vmem:[%s214_s2 + $0x8] sm:$0xff] %v103_v13 }

</bundles_post_ra>
